<compile_context>
chip_gen: v7x
topology: tpu7x:2x2x1
jax: 0.10.0
libtpu: 0.0.40
codegen_flags: <defaults>
</compile_context>

<pallas_src>
import jax
import jax.numpy as jnp
from jax.experimental import pallas as pl
from jax.experimental.pallas import tpu as pltpu


def _round_up(x: int, m: int) -> int:
    return ((x + m - 1) // m) * m


def ffn_kernel(x_ref, w1_ref, b1_ref, w2_ref, b2_ref, o_ref):
    # x_ref:  (TM, D) compute dtype   w1_ref: (D, H) compute dtype   b1_ref: (1, H) f32
    # w2_ref: (H, D) compute dtype    b2_ref: (1, D) f32             o_ref:  (TM, D) out dtype
    h = jnp.dot(x_ref[...], w1_ref[...], preferred_element_type=jnp.float32)
    h = jnp.maximum(h + b1_ref[...], 0.0)          # bias + ReLU in f32
    # TODO(synk): training-mode dropout (Bernoulli mask via pltpu.prng_*) omitted;
    # inference semantics (identity) are used here.
    h = h.astype(w2_ref.dtype)                     # back to compute dtype for the MXU
    out = jnp.dot(h, w2_ref[...], preferred_element_type=jnp.float32)
    o_ref[...] = (out + b2_ref[...]).astype(o_ref.dtype)


def positionwise_feed_forward(x, w1, b1, w2, b2, *, tile_rows=512,
                              compute_dtype=jnp.bfloat16):
    """x: (B, S, D).  w1: (D, H), b1: (H,), w2: (H, D), b2: (D,).

    Weights are stored pre-transposed as (in, out) so the kernel runs plain
    row-major matmuls on the MXU.
    """
    B, S, D = x.shape
    H = w1.shape[1]
    rows = B * S
    assert rows > 0

    # MXU-filling row tile: multiple of 256 (v6e/v7x), of 128 (v5e), of 16 (bf16).
    tm = min(int(tile_rows), _round_up(rows, 256))
    tm = max(_round_up(tm, 8), 8)
    rows_p = _round_up(rows, tm)
    grid = rows_p // tm

    x2d = x.reshape(rows, D)
    if rows_p != rows:
        x2d = jnp.pad(x2d, ((0, rows_p - rows), (0, 0)))  # padded rows discarded below

    x2d = x2d.astype(compute_dtype)
    w1c = w1.astype(compute_dtype)
    w2c = w2.astype(compute_dtype)
    b1_2d = b1.reshape(1, H).astype(jnp.float32)
    b2_2d = b2.reshape(1, D).astype(jnp.float32)

    itemsize = jnp.dtype(compute_dtype).itemsize
    out_itemsize = jnp.dtype(x.dtype).itemsize
    cost = pl.CostEstimate(
        flops=4 * rows_p * D * H,                       # 2*R*D*H per matmul
        transcendentals=0,
        bytes_accessed=int(
            rows_p * D * itemsize                       # x
            + D * H * itemsize + H * D * itemsize       # W1, W2
            + (H + D) * 4                               # biases
            + rows_p * D * out_itemsize                 # out
        ),
    )

    out2d = pl.pallas_call(
        ffn_kernel,
        out_shape=jax.ShapeDtypeStruct((rows_p, D), x.dtype),
        grid_spec=pltpu.PrefetchScalarGridSpec(
            num_scalar_prefetch=0,
            grid=(grid,),
            in_specs=[
                pl.BlockSpec((tm, D), lambda i: (i, 0)),   # x tile (pipelined over rows)
                pl.BlockSpec((D, H), lambda i: (0, 0)),    # W1 (constant index -> single DMA)
                pl.BlockSpec((1, H), lambda i: (0, 0)),    # b1
                pl.BlockSpec((H, D), lambda i: (0, 0)),    # W2
                pl.BlockSpec((1, D), lambda i: (0, 0)),    # b2
            ],
            out_specs=pl.BlockSpec((tm, D), lambda i: (i, 0)),
        ),
        compiler_params=pltpu.CompilerParams(
            dimension_semantics=("parallel",),             # megacore-shardable row axis
            vmem_limit_bytes=64 * 1024 * 1024,
        ),
        cost_estimate=cost,
    )(x2d, w1c, b1_2d, w2c, b2_2d)

    return out2d[:rows].reshape(B, S, D)


if __name__ == "__main__":
    # Small, TPU-tile-friendly shapes consistent with the module:
    #   batch=2, seq=8, d_model=128, hidden=256
    B, S, D, H = 2, 8, 128, 256

    key = jax.random.PRNGKey(0)
    kx, k1, kb1, k2, kb2 = jax.random.split(key, 5)

    x = jax.random.normal(kx, (B, S, D), dtype=jnp.float32)

    # Deterministic synthetic parameters (PyTorch Linear weight is (out, in);
    # kept pre-transposed as (in, out) for the kernel).
    w1 = jax.random.normal(k1, (D, H), dtype=jnp.float32) * (1.0 / jnp.sqrt(D))
    b1 = jax.random.normal(kb1, (H,), dtype=jnp.float32) * 0.01
    w2 = jax.random.normal(k2, (H, D), dtype=jnp.float32) * (1.0 / jnp.sqrt(H))
    b2 = jax.random.normal(kb2, (D,), dtype=jnp.float32) * 0.01

    # Pure-JAX reference (eval-mode dropout == identity).
    ref = jnp.maximum(x @ w1 + b1, 0.0) @ w2 + b2

    # f32 compute path: tight tolerance.
    out_f32 = positionwise_feed_forward(x, w1, b1, w2, b2,
                                        compute_dtype=jnp.float32)
    out_f32 = jax.block_until_ready(out_f32)
    assert out_f32.shape == (B, S, D)
    assert jnp.allclose(out_f32, ref, atol=1e-4, rtol=1e-4), "f32 path mismatch"

    # Default bf16 compute path (fast path): loosened tolerance.
    out = positionwise_feed_forward(x, w1, b1, w2, b2)
    out = jax.block_until_ready(out)
    assert out.shape == (B, S, D)
    max_err = float(jnp.max(jnp.abs(out - ref)))
    assert jnp.allclose(out, ref, atol=5e-2, rtol=5e-2), (
        f"bf16 path mismatch vs reference (max abs err {max_err})")

    print("KERNEL_OK")
</pallas_src>

<mosaic_0001>
module attributes {stable_mosaic.version = 11 : i64} {
  func.func @ffn_kernel(%arg0: i32, %arg1: memref<256x128xf32, #tpu.memory_space<vmem>>, %arg2: memref<128x256xf32, #tpu.memory_space<vmem>>, %arg3: memref<1x256xf32, #tpu.memory_space<vmem>>, %arg4: memref<256x128xf32, #tpu.memory_space<vmem>>, %arg5: memref<1x128xf32, #tpu.memory_space<vmem>>, %arg6: memref<256x128xf32, #tpu.memory_space<vmem>>) attributes {dimension_semantics = [#tpu.dimension_semantics<parallel>], iteration_bounds = array<i64: 1>, scalar_prefetch = 0 : i64, scratch_operands = 0 : i64, tpu.core_type = #tpu.core_type<tc>, window_params = [{transform_indices = @transform_0, window_bounds = array<i64: 256, 128>}, {pipeline_mode = #tpu.pipeline_mode<synchronous>, transform_indices = @transform_1, window_bounds = array<i64: 128, 256>}, {pipeline_mode = #tpu.pipeline_mode<synchronous>, transform_indices = @transform_2, window_bounds = array<i64: 1, 256>}, {pipeline_mode = #tpu.pipeline_mode<synchronous>, transform_indices = @transform_3, window_bounds = array<i64: 256, 128>}, {pipeline_mode = #tpu.pipeline_mode<synchronous>, transform_indices = @transform_4, window_bounds = array<i64: 1, 128>}, {transform_indices = @transform_5, window_bounds = array<i64: 256, 128>}]} {
    %c0 = arith.constant 0 : index
    %c0_0 = arith.constant 0 : index
    %0 = vector.load %arg1[%c0, %c0_0] : memref<256x128xf32, #tpu.memory_space<vmem>>, vector<256x128xf32>
    %c0_1 = arith.constant 0 : index
    %c0_2 = arith.constant 0 : index
    %1 = vector.load %arg2[%c0_1, %c0_2] : memref<128x256xf32, #tpu.memory_space<vmem>>, vector<128x256xf32>
    %cst = arith.constant dense<0.000000e+00> : vector<256x256xf32>
    %2 = tpu.matmul %0, %1, %cst {dimension_numbers = #tpu.dot_dimension_numbers<[1], [0], [0], [1], [0, 0, 1, 1], [], []>} : vector<256x128xf32>, vector<128x256xf32>, vector<256x256xf32> -> vector<256x256xf32>
    %c0_3 = arith.constant 0 : index
    %c0_4 = arith.constant 0 : index
    %3 = vector.load %arg3[%c0_3, %c0_4] : memref<1x256xf32, #tpu.memory_space<vmem>>, vector<1x256xf32>
    %4 = vector.broadcast %3 : vector<1x256xf32> to vector<256x256xf32>
    %5 = arith.addf %2, %4 : vector<256x256xf32>
    %cst_5 = arith.constant 0.000000e+00 : f32
    %6 = vector.broadcast %cst_5 : f32 to vector<256x256xf32>
    %7 = arith.maximumf %5, %6 : vector<256x256xf32>
    %c0_6 = arith.constant 0 : index
    %c0_7 = arith.constant 0 : index
    %8 = vector.load %arg4[%c0_6, %c0_7] : memref<256x128xf32, #tpu.memory_space<vmem>>, vector<256x128xf32>
    %cst_8 = arith.constant dense<0.000000e+00> : vector<256x128xf32>
    %9 = tpu.matmul %7, %8, %cst_8 {dimension_numbers = #tpu.dot_dimension_numbers<[1], [0], [0], [1], [0, 0, 1, 1], [], []>} : vector<256x256xf32>, vector<256x128xf32>, vector<256x128xf32> -> vector<256x128xf32>
    %c0_9 = arith.constant 0 : index
    %c0_10 = arith.constant 0 : index
    %10 = vector.load %arg5[%c0_9, %c0_10] : memref<1x128xf32, #tpu.memory_space<vmem>>, vector<1x128xf32>
    %11 = vector.broadcast %10 : vector<1x128xf32> to vector<256x128xf32>
    %12 = arith.addf %9, %11 : vector<256x128xf32>
    %c0_11 = arith.constant 0 : index
    %c0_12 = arith.constant 0 : index
    %13 = vector.load %arg6[%c0_11, %c0_12] : memref<256x128xf32, #tpu.memory_space<vmem>>, vector<256x128xf32>
    tpu.vector_store %arg6[%c0_11, %c0_12], %12 {strides = array<i32>} : memref<256x128xf32, #tpu.memory_space<vmem>>, vector<256x128xf32>,
    return
  }
  func.func @transform_0(%arg0: i32) -> (i32, i32) {
    %c0_i32 = arith.constant 0 : i32
    %c0_i32_0 = arith.constant 0 : i32
    return %arg0, %c0_i32 : i32, i32
  }
  func.func @transform_1(%arg0: i32) -> (i32, i32) {
    %c0_i32 = arith.constant 0 : i32
    %c0_i32_0 = arith.constant 0 : i32
    %c0_i32_1 = arith.constant 0 : i32
    return %c0_i32, %c0_i32_0 : i32, i32
  }
  func.func @transform_2(%arg0: i32) -> (i32, i32) {
    %c0_i32 = arith.constant 0 : i32
    %c0_i32_0 = arith.constant 0 : i32
    %c0_i32_1 = arith.constant 0 : i32
    return %c0_i32, %c0_i32_0 : i32, i32
  }
  func.func @transform_3(%arg0: i32) -> (i32, i32) {
    %c0_i32 = arith.constant 0 : i32
    %c0_i32_0 = arith.constant 0 : i32
    %c0_i32_1 = arith.constant 0 : i32
    return %c0_i32, %c0_i32_0 : i32, i32
  }
  func.func @transform_4(%arg0: i32) -> (i32, i32) {
    %c0_i32 = arith.constant 0 : i32
    %c0_i32_0 = arith.constant 0 : i32
    %c0_i32_1 = arith.constant 0 : i32
    return %c0_i32, %c0_i32_0 : i32, i32
  }
  func.func @transform_5(%arg0: i32) -> (i32, i32) {
    %c0_i32 = arith.constant 0 : i32
    %c0_i32_0 = arith.constant 0 : i32
    return %arg0, %c0_i32 : i32, i32
  }
}

</mosaic_0001>

<bundles_post_ra>
// kernel: tpu_custom_call.1
= control target key start
LH: loop header
LB: loop body
LE: loop exit
PB: predicated region body
PF: predicated region fallthrough
CT: control target
= control target key end

     0   :  { %10 = vsyncpa [#allocation3], 0  ;;  %s1351_s0 = inlined_call_operand.hbm [shape: f32[256,128], index: 0, kind: input, shape index: {}]   ;;  %s1352_s1 = inlined_call_operand.hbm [shape: f32[128,256], index: 1, kind: input, shape index: {}]   ;;  %s1353_s2 = inlined_call_operand.hbm [shape: f32[1,256], index: 2, kind: input, shape index: {}]   ;;  %s1354_s3 = inlined_call_operand.hbm [shape: f32[256,128], index: 3, kind: input, shape index: {}]   ;;  %s1355_s4 = inlined_call_operand.hbm [shape: f32[1,128], index: 4, kind: input, shape index: {}]   ;;  %s1356_s5 = inlined_call_operand.hbm [shape: f32[256,128], index: 5, kind: output, shape index: {}]  }
   0x1   :  { %11 = vsyncpa [#allocation6], 0 }
   0x2   :  { %12 = vsyncpa [#allocation9], 0 }
   0x3   :  { %13 = vsyncpa [#allocation4], 0  ;;  %s1062_s18 = smov [#allocation5]   ;;  %s922_s22 = scalar_lea.hbm %s1352_s1, 4096 }
   0x4   :  { %s31_s19 = sshll.u32 %s1062_s18, 4  ;;  %p923_p0 = scmp.ne.s32.totalorder %s1352_s1, %s922_s22  ;;  %s32_s19 = int_to_ptr.vmem [resolvable:$true] %s31_s19 }
   0x5   :  { %p926_p1 = scmp.lt.u32.totalorder %s922_s22, %s1352_s1 }
   0x7   :  { %p928_p2 = pnand %p926_p1, %p923_p0 }
   0x9   :  { %931 = shalt.err (!%p928_p2)
}
   0xa   :  { %s932_s27 = scalar_lea.vmem %s32_s19, 4096  ;;  %p937_p4 = scmp.lt.s32.totalorder %s32_s19, %s32_s19 }
   0xb   :  { %p933_p3 = scmp.ne.s32.totalorder %s32_s19, %s932_s27  ;;  %p938_p5 = scmp.lt.s32.totalorder %s932_s27, %s932_s27 }
   0xd   :  { %p939_p6 = por %p938_p5, %p937_p4 }
   0xf   :  { %p940_p7 = pnand %p939_p6, %p933_p3 }
  0x11   :  { %943 = shalt.err (!%p940_p7)
}
  0x12   :  { %s1063_s28 = smov 256   ;;  %s1064_s29 = smov 16  }
  0x13   :  { %37 = dma.hbm_to_vmem [thread:$0]  %s1352_s1, 4096, %s32_s19, [#allocation6], %s1063_s28, %s1063_s28, %s1064_s29  }
  0x14   :  { %s1065_s7 = smov [#allocation8]   ;;  %s1066_s9 = smov [#allocation2]  }
  0x15   :  { %s53_s8 = sshll.u32 %s1065_s7, 4  ;;  %s19_s10 = sshll.u32 %s1066_s9, 4  ;;  %s54_s8 = int_to_ptr.vmem [resolvable:$true] %s53_s8  ;;  %s20_s10 = int_to_ptr.vmem [resolvable:$true] %s19_s10 }
  0x16   :  { %s944_s13 = scalar_lea.hbm %s1354_s3, 4096 }
  0x17   :  { %p945_p8 = scmp.ne.s32.totalorder %s1354_s3, %s944_s13  ;;  %p948_p9 = scmp.lt.u32.totalorder %s944_s13, %s1354_s3 }
  0x19   :  { %p950_p10 = pnand %p948_p9, %p945_p8 }
  0x1b   :  { %953 = shalt.err (!%p950_p10)
}
  0x1c   :  { %s954_s1 = scalar_lea.vmem %s54_s8, 4096  ;;  %p959_p12 = scmp.lt.s32.totalorder %s54_s8, %s54_s8 }
  0x1d   :  { %p955_p11 = scmp.ne.s32.totalorder %s54_s8, %s954_s1  ;;  %p960_p13 = scmp.lt.s32.totalorder %s954_s1, %s954_s1 }
  0x1f   :  { %p961_p0 = por %p960_p13, %p959_p12 }
  0x21   :  { %p962_p1 = pnand %p961_p0, %p955_p11 }
  0x23   :  { %965 = shalt.err (!%p962_p1)
}
  0x24   :  { %s1067_s18 = smov 128   ;;  %s1068_s19 = smov 8  }
  0x25   :  { %59 = dma.hbm_to_vmem [thread:$0]  %s1354_s3, 4096, %s54_s8, [#allocation9], %s1067_s18, %s1067_s18, %s1068_s19  }
  0x26   :  { %s966_s24 = scalar_lea.hbm %s1351_s0, 4096 }
  0x27   :  { %p967_p2 = scmp.ne.s32.totalorder %s1351_s0, %s966_s24  ;;  %p970_p3 = scmp.lt.u32.totalorder %s966_s24, %s1351_s0 }
  0x29   :  { %p972_p4 = pnand %p970_p3, %p967_p2 }
  0x2b   :  { %975 = shalt.err (!%p972_p4)
}
  0x2c   :  { %s976_s29 = scalar_lea.vmem %s20_s10, 4096  ;;  %p981_p6 = scmp.lt.s32.totalorder %s20_s10, %s20_s10 }
  0x2d   :  { %p977_p5 = scmp.ne.s32.totalorder %s20_s10, %s976_s29  ;;  %p982_p7 = scmp.lt.s32.totalorder %s976_s29, %s976_s29 }
  0x2f   :  { %p983_p8 = por %p982_p7, %p981_p6 }
  0x31   :  { %p984_p9 = pnand %p983_p8, %p977_p5 }
  0x33   :  { %987 = shalt.err (!%p984_p9)
}
  0x34   :  { %25 = dma.hbm_to_vmem [thread:$0]  %s1351_s0, 4096, %s20_s10, [#allocation3], %s1067_s18, %s1067_s18, %s1068_s19  }
  0x35   :  { %s1069_s6 = smov [#allocation7]   ;;  %s1070_s8 = smov [#allocation10]  }
  0x36   :  { %s44_s7 = sshll.u32 %s1069_s6, 4  ;;  %s66_s9 = sshll.u32 %s1070_s8, 4  ;;  %s45_s7 = int_to_ptr.vmem [resolvable:$true] %s44_s7  ;;  %s67_s9 = int_to_ptr.vmem [resolvable:$true] %s66_s9 }
  0x37   :  { %s988_s13 = scalar_lea.hbm %s1353_s2, 32 }
  0x38   :  { %p989_p10 = scmp.ne.s32.totalorder %s1353_s2, %s988_s13  ;;  %p992_p11 = scmp.lt.u32.totalorder %s988_s13, %s1353_s2 }
  0x3a   :  { %p994_p12 = pnand %p992_p11, %p989_p10 }
  0x3c   :  { %997 = shalt.err (!%p994_p12)
}
  0x3d   :  { %s998_s0 = scalar_lea.vmem %s45_s7, 32  ;;  %p1003_p0 = scmp.lt.s32.totalorder %s45_s7, %s45_s7 }
  0x3e   :  { %p999_p13 = scmp.ne.s32.totalorder %s45_s7, %s998_s0  ;;  %p1004_p1 = scmp.lt.s32.totalorder %s998_s0, %s998_s0 }
  0x40   :  { %p1005_p2 = por %p1004_p1, %p1003_p0 }
  0x42   :  { %p1006_p3 = pnand %p1005_p2, %p999_p13 }
  0x44   :  { %1009 = shalt.err (!%p1006_p3)
}
  0x45   :  { %47 = dma.hbm_to_vmem [thread:$0]  %s1353_s2, 32, %s45_s7, [#allocation6]  }
  0x46   :  { %s1010_s22 = scalar_lea.hbm %s1355_s4, 16 }
  0x47   :  { %p1011_p4 = scmp.ne.s32.totalorder %s1355_s4, %s1010_s22  ;;  %p1014_p5 = scmp.lt.u32.totalorder %s1010_s22, %s1355_s4 }
  0x49   :  { %p1016_p6 = pnand %p1014_p5, %p1011_p4 }
  0x4b   :  { %1019 = shalt.err (!%p1016_p6)
}
  0x4c   :  { %s1020_s27 = scalar_lea.vmem %s67_s9, 16  ;;  %s1024_s28 = scalar_lea.vmem %s67_s9, 32 }
  0x4d   :  { %p1021_p7 = scmp.ne.s32.totalorder %s67_s9, %s1020_s27  ;;  %p1025_p8 = scmp.lt.s32.totalorder %s67_s9, %s67_s9 }
  0x4e   :  { %p1026_p9 = scmp.lt.s32.totalorder %s1024_s28, %s1020_s27 }
  0x50   :  { %p1027_p10 = por %p1026_p9, %p1025_p8 }
  0x52   :  { %p1028_p11 = pnand %p1027_p10, %p1021_p7 }
  0x54   :  { %1031 = shalt.err (!%p1028_p11)
}
  0x55   :  { %69 = dma.hbm_to_vmem [thread:$0]  %s1355_s4, 16, %s67_s9, [#allocation9]  }
  0x56   :  { %1054 = dma.done.wait [#allocation3], 4096  }
  0x57   :  { %1055 = vsyncadd [#allocation3], 4294963200 }
  0x58   :  { %1056 = dma.done.wait [#allocation6], 4128  }
  0x59   :  { %1057 = vsyncadd [#allocation6], 4294963168 }
  0x5a   :  { %1058 = dma.done.wait [#allocation9], 4112  }
  0x5b   :  { %1059 = vsyncadd [#allocation9], 4294963184  ;;  %v1071_v0 = vmov 0.0   ;;  %v118_v1 = vld [vmem:[#allocation5 + $0x8] sm:$0xff]  ;;  %v120_v2 = vld [vmem:[#allocation5 + $0x18] sm:$0xff]  ;;  %v1072_v53 = vmov 0.0|0.0  }
  0x5c   :  { %225 = vmatprep.mubr.f32.mxu0 %v1071_v0  ;;  %v117_v3 = vld [vmem:[#allocation5] sm:$0xff]  ;;  %v798_v4 = vpack.c.bf16 %v120_v2, %v118_v1  ;;  %v119_v5 = vld [vmem:[#allocation5 + $0x10] sm:$0xff]  ;;  %v122_v6 = vld [vmem:[#allocation5 + $0x28] sm:$0xff]  ;;  %878 = vmatprep.subr.bf16.mxu1 %v1072_v53  ;;  %s1073_s4 = smov [#allocation11]  }
  0x5d   :  { %v124_v7 = vld [vmem:[#allocation5 + $0x38] sm:$0xff]  ;;  %v800_v8 = vpack.c.bf16 %v119_v5, %v117_v3  ;;  %v121_v10 = vld [vmem:[#allocation5 + $0x20] sm:$0xff]  ;;  %v123_v11 = vld [vmem:[#allocation5 + $0x30] sm:$0xff]  ;;  %s783_s3 = sshll.u32 %s1073_s4, 4  ;;  %s784_s3 = int_to_ptr.vmem [resolvable:$true] %s783_s3 }
  0x5e   :  { %v802_v9 = vpack.c.bf16 %v124_v7, %v122_v6  ;;  %v126_v12 = vld [vmem:[#allocation5 + $0x48] sm:$0xff]  ;;  %799 = vmatprep.subr.bf16.mxu0 %v798_v4  ;;  %v128_v13 = vld [vmem:[#allocation5 + $0x58] sm:$0xff]  ;;  %v804_v14 = vpack.c.bf16 %v123_v11, %v121_v10  ;;  %v125_v16 = vld [vmem:[#allocation5 + $0x40] sm:$0xff]  ;;  %s1032_s30 = scalar_lea.vmem %s784_s3, 4096  ;;  %p1037_p13 = scmp.lt.s32.totalorder %s784_s3, %s784_s3 }
  0x5f   :  { %801 = vmatpush1.bf16.msra.mxu0 %v800_v8  ;;  %v806_v15 = vpack.c.bf16 %v128_v13, %v126_v12  ;;  %v127_v17 = vld [vmem:[#allocation5 + $0x50] sm:$0xff]  ;;  %v130_v18 = vld [vmem:[#allocation5 + $0x68] sm:$0xff]  ;;  %v132_v19 = vld [vmem:[#allocation5 + $0x78] sm:$0xff]  ;;  %p1033_p12 = scmp.ne.s32.totalorder %s784_s3, %s1032_s30  ;;  %p1038_p0 = scmp.lt.s32.totalorder %s1032_s30, %s1032_s30 }
  0x60   :  { %803 = vmatprep.subr.bf16.mxu0 %v802_v9  ;;  %v808_v20 = vpack.c.bf16 %v127_v17, %v125_v16  ;;  %v810_v21 = vpack.c.bf16 %v132_v19, %v130_v18  ;;  %v129_v22 = vld [vmem:[#allocation5 + $0x60] sm:$0xff]  ;;  %v131_v23 = vld [vmem:[#allocation5 + $0x70] sm:$0xff]  ;;  %v134_v24 = vld [vmem:[#allocation5 + $0x88] sm:$0xff] }
  0x61   :  { %v136_v25 = vld [vmem:[#allocation5 + $0x98] sm:$0xff]  ;;  %v812_v26 = vpack.c.bf16 %v131_v23, %v129_v22  ;;  %v133_v28 = vld [vmem:[#allocation5 + $0x80] sm:$0xff]  ;;  %v135_v29 = vld [vmem:[#allocation5 + $0x90] sm:$0xff]  ;;  %p1039_p1 = por %p1038_p0, %p1037_p13 }
  0x62   :  { %v814_v27 = vpack.c.bf16 %v136_v25, %v134_v24  ;;  %v138_v30 = vld [vmem:[#allocation5 + $0xa8] sm:$0xff]  ;;  %v140_v31 = vld [vmem:[#allocation5 + $0xb8] sm:$0xff]  ;;  %v816_v32 = vpack.c.bf16 %v135_v29, %v133_v28  ;;  %v137_v34 = vld [vmem:[#allocation5 + $0xa0] sm:$0xff] }
  0x63   :  { %805 = vmatpush1.bf16.msra.mxu0 %v804_v14  ;;  %v818_v33 = vpack.c.bf16 %v140_v31, %v138_v30  ;;  %v139_v35 = vld [vmem:[#allocation5 + $0xb0] sm:$0xff]  ;;  %v142_v36 = vld [vmem:[#allocation5 + $0xc8] sm:$0xff]  ;;  %v144_v37 = vld [vmem:[#allocation5 + $0xd8] sm:$0xff]  ;;  %p1040_p2 = pnand %p1039_p1, %p1033_p12 }
  0x64   :  { %807 = vmatprep.subr.bf16.mxu0 %v806_v15  ;;  %v820_v38 = vpack.c.bf16 %v139_v35, %v137_v34  ;;  %v822_v39 = vpack.c.bf16 %v144_v37, %v142_v36  ;;  %v141_v40 = vld [vmem:[#allocation5 + $0xc0] sm:$0xff]  ;;  %v143_v41 = vld [vmem:[#allocation5 + $0xd0] sm:$0xff]  ;;  %v146_v42 = vld [vmem:[#allocation5 + $0xe8] sm:$0xff] }
  0x65   :  { %v148_v43 = vld [vmem:[#allocation5 + $0xf8] sm:$0xff]  ;;  %v824_v44 = vpack.c.bf16 %v143_v41, %v141_v40  ;;  %v145_v46 = vld [vmem:[#allocation5 + $0xe0] sm:$0xff]  ;;  %v147_v47 = vld [vmem:[#allocation5 + $0xf0] sm:$0xff] }
  0x66   :  { %v826_v45 = vpack.c.bf16 %v148_v43, %v146_v42  ;;  %v828_v48 = vpack.c.bf16 %v147_v47, %v145_v46  ;;  %v482_v49 = vld [vmem:[#allocation8] sm:$0xff]  ;;  %v483_v50 = vld [vmem:[#allocation8 + $0x8] sm:$0xff]  ;;  %v484_v54 = vld [vmem:[#allocation8 + $0x10] sm:$0xff] }
  0x67   :  { %809 = vmatpush1.bf16.msra.mxu0 %v808_v20  ;;  %v85_v51 = vld [vmem:[#allocation2] sm:$0xff]  ;;  %v831_v52 = vpack.c.bf16 %v483_v50, %v482_v49  ;;  %v86_v56 = vld [vmem:[#allocation2 + $0x8] sm:$0xff]  ;;  %v87_v60 = vld [vmem:[#allocation2 + $0x10] sm:$0xff] }
  0x68   :  { %811 = vmatprep.subr.bf16.mxu0 %v810_v21  ;;  %v485_v55 = vld [vmem:[#allocation8 + $0x18] sm:$0xff]  ;;  %v486_v58 = vld [vmem:[#allocation8 + $0x20] sm:$0xff]  ;;  %v487_v59 = vld [vmem:[#allocation8 + $0x28] sm:$0xff] }
  0x69   :  { %894 = vmatpush1.bf16.msra.mxu1 %v831_v52  ;;  %v834_v57 = vpack.c.bf16 %v485_v55, %v484_v54  ;;  %v837_v61 = vpack.c.bf16 %v487_v59, %v486_v58  ;;  %v488_v62 = vld [vmem:[#allocation8 + $0x30] sm:$0xff]  ;;  %v489_v63 = vld [vmem:[#allocation8 + $0x38] sm:$0xff]  ;;  %v490_v3 = vld [vmem:[#allocation8 + $0x40] sm:$0xff] }
  0x6a   :  { %879 = vmatprep.subr.bf16.mxu1 %v1072_v53  ;;  %v88_v1 = vld [vmem:[#allocation2 + $0x18] sm:$0xff]  ;;  %v840_v2 = vpack.c.bf16 %v489_v63, %v488_v62  ;;  %v491_v4 = vld [vmem:[#allocation8 + $0x48] sm:$0xff]  ;;  %v89_v5 = vld [vmem:[#allocation2 + $0x20] sm:$0xff] }
  0x6b   :  { %813 = vmatpush1.bf16.msra.mxu0 %v812_v26  ;;  %v843_v6 = vpack.c.bf16 %v491_v4, %v490_v3  ;;  %v492_v7 = vld [vmem:[#allocation8 + $0x50] sm:$0xff]  ;;  %v493_v8 = vld [vmem:[#allocation8 + $0x58] sm:$0xff]  ;;  %v90_v9 = vld [vmem:[#allocation2 + $0x28] sm:$0xff]  ;;  %v151_v4 = vlaneseq }
  0x6c   :  { %815 = vmatprep.subr.bf16.mxu0 %v814_v27  ;;  %v846_v10 = vpack.c.bf16 %v493_v8, %v492_v7  ;;  %v494_v11 = vld [vmem:[#allocation8 + $0x60] sm:$0xff]  ;;  %v495_v12 = vld [vmem:[#allocation8 + $0x68] sm:$0xff]  ;;  %v496_v15 = vld [vmem:[#allocation8 + $0x70] sm:$0xff] }
  0x6d   :  { %895 = vmatpush1.bf16.msra.mxu1 %v834_v57  ;;  %v91_v13 = vld [vmem:[#allocation2 + $0x30] sm:$0xff]  ;;  %v849_v14 = vpack.c.bf16 %v495_v12, %v494_v11  ;;  %v497_v16 = vld [vmem:[#allocation8 + $0x78] sm:$0xff]  ;;  %v498_v19 = vld [vmem:[#allocation8 + $0x80] sm:$0xff] }
  0x6e   :  { %880 = vmatprep.subr.bf16.mxu1 %v1072_v53  ;;  %v92_v17 = vld [vmem:[#allocation2 + $0x38] sm:$0xff]  ;;  %v852_v18 = vpack.c.bf16 %v497_v16, %v496_v15  ;;  %v499_v20 = vld [vmem:[#allocation8 + $0x88] sm:$0xff]  ;;  %v93_v21 = vld [vmem:[#allocation2 + $0x40] sm:$0xff] }
  0x6f   :  { %817 = vmatpush1.bf16.msra.mxu0 %v816_v32  ;;  %v855_v22 = vpack.c.bf16 %v499_v20, %v498_v19  ;;  %v500_v23 = vld [vmem:[#allocation8 + $0x90] sm:$0xff]  ;;  %v501_v24 = vld [vmem:[#allocation8 + $0x98] sm:$0xff]  ;;  %v94_v25 = vld [vmem:[#allocation2 + $0x48] sm:$0xff] }
  0x70   :  { %819 = vmatprep.subr.bf16.mxu0 %v818_v33  ;;  %v858_v26 = vpack.c.bf16 %v501_v24, %v500_v23  ;;  %v502_v27 = vld [vmem:[#allocation8 + $0xa0] sm:$0xff]  ;;  %v503_v28 = vld [vmem:[#allocation8 + $0xa8] sm:$0xff]  ;;  %v504_v31 = vld [vmem:[#allocation8 + $0xb0] sm:$0xff] }
  0x71   :  { %896 = vmatpush1.bf16.msra.mxu1 %v837_v61  ;;  %v95_v29 = vld [vmem:[#allocation2 + $0x50] sm:$0xff]  ;;  %v861_v30 = vpack.c.bf16 %v503_v28, %v502_v27  ;;  %v505_v32 = vld [vmem:[#allocation8 + $0xb8] sm:$0xff]  ;;  %v506_v35 = vld [vmem:[#allocation8 + $0xc0] sm:$0xff] }
  0x72   :  { %881 = vmatprep.subr.bf16.mxu1 %v1072_v53  ;;  %v96_v33 = vld [vmem:[#allocation2 + $0x58] sm:$0xff]  ;;  %v864_v34 = vpack.c.bf16 %v505_v32, %v504_v31  ;;  %v507_v36 = vld [vmem:[#allocation8 + $0xc8] sm:$0xff]  ;;  %v97_v37 = vld [vmem:[#allocation2 + $0x60] sm:$0xff] }
  0x73   :  { %821 = vmatpush1.bf16.msra.mxu0 %v820_v38  ;;  %v867_v38 = vpack.c.bf16 %v507_v36, %v506_v35  ;;  %v509_v40 = vld [vmem:[#allocation8 + $0xd8] sm:$0xff]  ;;  %v98_v41 = vld [vmem:[#allocation2 + $0x68] sm:$0xff]  ;;  %v99_v43 = vld [vmem:[#allocation2 + $0x70] sm:$0xff] }
  0x74   :  { %823 = vmatprep.subr.bf16.mxu0 %v822_v39  ;;  %v508_v39 = vld [vmem:[#allocation8 + $0xd0] sm:$0xff]  ;;  %v102_v46 = vld [vmem:[#allocation2 + $0x88] sm:$0xff]  ;;  %v105_v49 = vld [vmem:[#allocation2 + $0xa0] sm:$0xff] }
  0x75   :  { %897 = vmatpush1.bf16.msra.mxu1 %v840_v2  ;;  %v870_v42 = vpack.c.bf16 %v509_v40, %v508_v39  ;;  %v103_v47 = vld [vmem:[#allocation2 + $0x90] sm:$0xff]  ;;  %v510_v50 = vld [vmem:[#allocation8 + $0xe0] sm:$0xff]  ;;  %v108_v59 = vld [vmem:[#allocation2 + $0xb8] sm:$0xff] }
  0x76   :  { %882 = vmatprep.subr.bf16.mxu1 %v1072_v53  ;;  %v512_v55 = vld [vmem:[#allocation8 + $0xf0] sm:$0xff]  ;;  %v113_v63 = vld [vmem:[#allocation2 + $0xe0] sm:$0xff] }
  0x77   :  { %825 = vmatpush1.bf16.msra.mxu0 %v824_v44  ;;  %v100_v44 = vld [vmem:[#allocation2 + $0x78] sm:$0xff]  ;;  %v111_v62 = vld [vmem:[#allocation2 + $0xd0] sm:$0xff]  ;;  %v149_v7 = vld [vmem:[#allocation7] sm:$0x3] }
  0x78   :  { %827 = vmatprep.subr.bf16.mxu0 %v826_v45  ;;  %v101_v45 = vld [vmem:[#allocation2 + $0x80] sm:$0xff]  ;;  %v116_v3 = vld [vmem:[#allocation2 + $0xf8] sm:$0xff] }
  0x79   :  { %898 = vmatpush1.bf16.msra.mxu1 %v843_v6 }
  0x7a   :  { %883 = vmatprep.subr.bf16.mxu1 %v1072_v53 }
  0x7b   :  { %829 = vmatpush1.bf16.msra.mxu0 %v828_v48  ;;  %v104_v48 = vld [vmem:[#allocation2 + $0x98] sm:$0xff] }
  0x7c   :  { %830 = vmatprep.subr.bf16.mxu0 %v1072_v53 }
  0x7d   :  { %899 = vmatpush1.bf16.msra.mxu1 %v846_v10 }
  0x7e   :  { %226 = vmatmul.mubr.f32.vlgmr.msra.gmra.mrb[0].mxu0 %v85_v51  ;;  %884 = vmatprep.subr.bf16.mxu1 %v1072_v53  ;;  %v511_v51 = vld [vmem:[#allocation8 + $0xe8] sm:$0xff] }
  0x7f   :  { %231 = vmatprep.mubr.f32.mxu0 %v1071_v0  ;;  %832 = vmatpush1.bf16.msra.mxu0 %v831_v52  ;;  %v106_v52 = vld [vmem:[#allocation2 + $0xa8] sm:$0xff]  ;;  %v873_v54 = vpack.c.bf16 %v511_v51, %v510_v50 }
  0x80   :  { %833 = vmatprep.subr.bf16.mxu0 %v1072_v53 }
  0x81   :  { %900 = vmatpush1.bf16.msra.mxu1 %v849_v14 }
  0x82   :  { %232 = vmatmul.mubr.f32.gmra.mrb[2].mxu0 %v86_v56  ;;  %885 = vmatprep.subr.bf16.mxu1 %v1072_v53  ;;  %v513_v56 = vld [vmem:[#allocation8 + $0xf8] sm:$0xff] }
  0x83   :  { %237 = vmatprep.mubr.f32.mxu0 %v1071_v0  ;;  %835 = vmatpush1.bf16.msra.mxu0 %v834_v57  ;;  %v107_v57 = vld [vmem:[#allocation2 + $0xb0] sm:$0xff]  ;;  %v876_v58 = vpack.c.bf16 %v513_v56, %v512_v55 }
  0x84   :  { %836 = vmatprep.subr.bf16.mxu0 %v1072_v53 }
  0x85   :  { %901 = vmatpush1.bf16.msra.mxu1 %v852_v18 }
  0x86   :  { %238 = vmatmul.mubr.f32.gmra.mrb[4].mxu0 %v87_v60  ;;  %886 = vmatprep.subr.bf16.mxu1 %v1072_v53  ;;  %v109_v60 = vld [vmem:[#allocation2 + $0xc0] sm:$0xff] }
  0x87   :  { %243 = vmatprep.mubr.f32.mxu0 %v1071_v0  ;;  %838 = vmatpush1.bf16.msra.mxu0 %v837_v61  ;;  %v110_v61 = vld [vmem:[#allocation2 + $0xc8] sm:$0xff] }
  0x88   :  { %839 = vmatprep.subr.bf16.mxu0 %v1072_v53 }
  0x89   :  { %902 = vmatpush1.bf16.msra.mxu1 %v855_v22 }
  0x8a   :  { %244 = vmatmul.mubr.f32.gmra.mrb[6].mxu0 %v88_v1  ;;  %887 = vmatprep.subr.bf16.mxu1 %v1072_v53  ;;  %v114_v1 = vld [vmem:[#allocation2 + $0xe8] sm:$0xff] }
  0x8b   :  { %249 = vmatprep.mubr.f32.mxu0 %v1071_v0  ;;  %841 = vmatpush1.bf16.msra.mxu0 %v840_v2  ;;  %v115_v2 = vld [vmem:[#allocation2 + $0xf0] sm:$0xff] }
  0x8c   :  { %842 = vmatprep.subr.bf16.mxu0 %v1072_v53 }
  0x8d   :  { %903 = vmatpush1.bf16.msra.mxu1 %v858_v26 }
  0x8e   :  { %250 = vmatmul.mubr.f32.gmra.mrb[8].mxu0 %v89_v5  ;;  %888 = vmatprep.subr.bf16.mxu1 %v1072_v53  ;;  %v152_v5 = vshrl.u32 %v151_v4, 7 }
  0x8f   :  { %255 = vmatprep.mubr.f32.mxu0 %v1071_v0  ;;  %844 = vmatpush1.bf16.msra.mxu0 %v843_v6 }
  0x90   :  { %845 = vmatprep.subr.bf16.mxu0 %v1072_v53  ;;  %v153_v6 = vsub.s32 0, %v152_v5  ;;  %v157_v8 = vsub.s32 1, %v152_v5 }
  0x91   :  { %904 = vmatpush1.bf16.msra.mxu1 %v861_v30 }
  0x92   :  { %256 = vmatmul.mubr.f32.gmra.mrb[10].mxu0 %v90_v9  ;;  %889 = vmatprep.subr.bf16.mxu1 %v1072_v53  ;;  %v1234_v9 = vrot.slane %v149_v7, %v153_v6 }
  0x93   :  { %261 = vmatprep.mubr.f32.mxu0 %v1071_v0  ;;  %847 = vmatpush1.bf16.msra.mxu0 %v846_v10  ;;  %v1236_v10 = vrot.slane %v149_v7, %v157_v8 }
  0x94   :  { %848 = vmatprep.subr.bf16.mxu0 %v1072_v53 }
  0x95   :  { %905 = vmatpush1.bf16.msra.mxu1 %v864_v34 }
  0x96   :  { %262 = vmatmul.mubr.f32.gmra.mrb[12].mxu0 %v91_v13  ;;  %890 = vmatprep.subr.bf16.mxu1 %v1072_v53 }
  0x97   :  { %267 = vmatprep.mubr.f32.mxu0 %v1071_v0  ;;  %850 = vmatpush1.bf16.msra.mxu0 %v849_v14 }
  0x98   :  { %851 = vmatprep.subr.bf16.mxu0 %v1072_v53 }
  0x99   :  { %906 = vmatpush1.bf16.msra.mxu1 %v867_v38 }
  0x9a   :  { %268 = vmatmul.mubr.f32.gmra.mrb[14].mxu0 %v92_v17  ;;  %891 = vmatprep.subr.bf16.mxu1 %v1072_v53 }
  0x9b   :  { %273 = vmatprep.mubr.f32.mxu0 %v1071_v0  ;;  %853 = vmatpush1.bf16.msra.mxu0 %v852_v18 }
  0x9c   :  { %854 = vmatprep.subr.bf16.mxu0 %v1072_v53 }
  0x9d   :  { %907 = vmatpush1.bf16.msra.mxu1 %v870_v42 }
  0x9e   :  { %274 = vmatmul.mubr.f32.gmra.mrb[16].mxu0 %v93_v21  ;;  %892 = vmatprep.subr.bf16.mxu1 %v1072_v53 }
  0x9f   :  { %279 = vmatprep.mubr.f32.mxu0 %v1071_v0  ;;  %856 = vmatpush1.bf16.msra.mxu0 %v855_v22 }
  0xa0   :  { %857 = vmatprep.subr.bf16.mxu0 %v1072_v53 }
  0xa1   :  { %908 = vmatpush1.bf16.msra.mxu1 %v873_v54 }
  0xa2   :  { %280 = vmatmul.mubr.f32.gmra.mrb[18].mxu0 %v94_v25  ;;  %893 = vmatprep.subr.bf16.mxu1 %v1072_v53 }
  0xa3   :  { %285 = vmatprep.mubr.f32.mxu0 %v1071_v0  ;;  %859 = vmatpush1.bf16.msra.mxu0 %v858_v26 }
  0xa4   :  { %860 = vmatprep.subr.bf16.mxu0 %v1072_v53 }
  0xa5   :  { %909 = vmatpush1.bf16.msra.mxu1 %v876_v58 }
  0xa6   :  { %286 = vmatmul.mubr.f32.gmra.mrb[20].mxu0 %v95_v29 }
  0xa7   :  { %291 = vmatprep.mubr.f32.mxu0 %v1071_v0  ;;  %862 = vmatpush1.bf16.msra.mxu0 %v861_v30 }
  0xa8   :  { %863 = vmatprep.subr.bf16.mxu0 %v1072_v53 }
  0xaa   :  { %292 = vmatmul.mubr.f32.gmra.mrb[22].mxu0 %v96_v33 }
  0xab   :  { %297 = vmatprep.mubr.f32.mxu0 %v1071_v0  ;;  %865 = vmatpush1.bf16.msra.mxu0 %v864_v34 }
  0xac   :  { %866 = vmatprep.subr.bf16.mxu0 %v1072_v53 }
  0xae   :  { %298 = vmatmul.mubr.f32.gmra.mrb[24].mxu0 %v97_v37 }
  0xaf   :  { %303 = vmatprep.mubr.f32.mxu0 %v1071_v0  ;;  %868 = vmatpush1.bf16.msra.mxu0 %v867_v38 }
  0xb0   :  { %869 = vmatprep.subr.bf16.mxu0 %v1072_v53 }
  0xb2   :  { %304 = vmatmul.mubr.f32.gmra.mrb[26].mxu0 %v98_v41 }
  0xb3   :  { %309 = vmatprep.mubr.f32.mxu0 %v1071_v0  ;;  %871 = vmatpush1.bf16.msra.mxu0 %v870_v42 }
  0xb4   :  { %872 = vmatprep.subr.bf16.mxu0 %v1072_v53 }
  0xb6   :  { %310 = vmatmul.mubr.f32.gmra.mrb[28].mxu0 %v99_v43 }
  0xb7   :  { %315 = vmatprep.mubr.f32.mxu0 %v1071_v0  ;;  %874 = vmatpush1.bf16.msra.mxu0 %v873_v54 }
  0xb8   :  { %875 = vmatprep.subr.bf16.mxu0 %v1072_v53  ;;  %v112_v53 = vld [vmem:[#allocation2 + $0xd8] sm:$0xff] }
  0xba   :  { %316 = vmatmul.mubr.f32.gmra.mrb[30].mxu0 %v100_v44 }
  0xbb   :  { %321 = vmatprep.mubr.f32.mxu0 %v1071_v0  ;;  %877 = vmatpush1.bf16.msra.mxu0 %v876_v58 }
  0xbe   :  { %322 = vmatmul.mubr.f32.gmra.mrb[32].mxu0 %v101_v45 }
  0xbf   :  { %327 = vmatprep.mubr.f32.mxu0 %v1071_v0 }
  0xc2   :  { %328 = vmatmul.mubr.f32.gmra.mrb[34].mxu0 %v102_v46 }
  0xc3   :  { %333 = vmatprep.mubr.f32.mxu0 %v1071_v0 }
  0xc6   :  { %334 = vmatmul.mubr.f32.gmra.mrb[36].mxu0 %v103_v47 }
  0xc7   :  { %339 = vmatprep.mubr.f32.mxu0 %v1071_v0 }
  0xca   :  { %340 = vmatmul.mubr.f32.gmra.mrb[38].mxu0 %v104_v48 }
  0xcb   :  { %345 = vmatprep.mubr.f32.mxu0 %v1071_v0 }
  0xce   :  { %346 = vmatmul.mubr.f32.gmra.mrb[40].mxu0 %v105_v49 }
  0xcf   :  { %351 = vmatprep.mubr.f32.mxu0 %v1071_v0 }
  0xd2   :  { %352 = vmatmul.mubr.f32.gmra.mrb[42].mxu0 %v106_v52 }
  0xd3   :  { %357 = vmatprep.mubr.f32.mxu0 %v1071_v0 }
  0xd6   :  { %358 = vmatmul.mubr.f32.gmra.mrb[44].mxu0 %v107_v57 }
  0xd7   :  { %363 = vmatprep.mubr.f32.mxu0 %v1071_v0 }
  0xda   :  { %364 = vmatmul.mubr.f32.gmra.mrb[46].mxu0 %v108_v59 }
  0xdb   :  { %369 = vmatprep.mubr.f32.mxu0 %v1071_v0 }
  0xde   :  { %370 = vmatmul.mubr.f32.gmra.mrb[48].mxu0 %v109_v60 }
  0xdf   :  { %375 = vmatprep.mubr.f32.mxu0 %v1071_v0 }
  0xe2   :  { %376 = vmatmul.mubr.f32.gmra.mrb[50].mxu0 %v110_v61 }
  0xe3   :  { %381 = vmatprep.mubr.f32.mxu0 %v1071_v0 }
  0xe6   :  { %382 = vmatmul.mubr.f32.gmra.mrb[52].mxu0 %v111_v62 }
  0xe7   :  { %387 = vmatprep.mubr.f32.mxu0 %v1071_v0 }
  0xea   :  { %388 = vmatmul.mubr.f32.gmra.mrb[54].mxu0 %v112_v53 }
  0xeb   :  { %393 = vmatprep.mubr.f32.mxu0 %v1071_v0 }
  0xee   :  { %394 = vmatmul.mubr.f32.gmra.mrb[56].mxu0 %v113_v63 }
  0xef   :  { %399 = vmatprep.mubr.f32.mxu0 %v1071_v0 }
  0xf2   :  { %400 = vmatmul.mubr.f32.gmra.mrb[58].mxu0 %v114_v1 }
  0xf3   :  { %405 = vmatprep.mubr.f32.mxu0 %v1071_v0 }
  0xf6   :  { %406 = vmatmul.mubr.f32.gmra.mrb[60].mxu0 %v115_v2 }
  0xf7   :  { %411 = vmatprep.mubr.f32.mxu0 %v1071_v0 }
  0xfa   :  { %412 = vmatmul.mubr.f32.gmra.mrb[62].mxu0 %v116_v3 }
 0x151   :  { %v227_v11 = vpop.f32.mrb[0].mxu0 }
 0x152   :  { %v228_v12 = vadd.f32 %v227_v11, %v1234_v9  ;;  %v229_v13 = vpop.f32.mrb[1].mxu0 }
 0x153   :  { %v230_v14 = vadd.f32 %v229_v13, %v1236_v10 }
 0x154   :  { %v418_v0 = vmax.f32 %v228_v12, 0.0 }
 0x155   :  { %v419_v15 = vmax.f32 %v230_v14, 0.0  ;;  %v233_v16 = vpop.f32.mrb[2].mxu0 }
 0x156   :  { %v234_v17 = vadd.f32 %v233_v16, %v1234_v9  ;;  %v235_v18 = vpop.f32.mrb[3].mxu0 }
 0x157   :  { %v236_v19 = vadd.f32 %v235_v18, %v1236_v10  ;;  %585 = vmatprep.mubr.f32.mxu0 %v419_v15 }
 0x158   :  { %586 = vmatmul.mubr.f32.vlgmr.msra.gmra.mrb[64].mxu0 %v418_v0  ;;  %v420_v22 = vmax.f32 %v234_v17, 0.0 }
 0x159   :  { %v421_v20 = vmax.f32 %v236_v19, 0.0  ;;  %v239_v21 = vpop.f32.mrb[4].mxu0 }
 0x15a   :  { %v240_v23 = vadd.f32 %v239_v21, %v1234_v9  ;;  %v241_v24 = vpop.f32.mrb[5].mxu0 }
 0x15b   :  { %v242_v25 = vadd.f32 %v241_v24, %v1236_v10  ;;  %590 = vmatprep.mubr.f32.mxu0 %v421_v20 }
 0x15c   :  { %591 = vmatmul.mubr.f32.gmra.mrb[66].mxu0 %v420_v22  ;;  %v422_v28 = vmax.f32 %v240_v23, 0.0 }
 0x15d   :  { %v423_v26 = vmax.f32 %v242_v25, 0.0  ;;  %v245_v27 = vpop.f32.mrb[6].mxu0 }
 0x15e   :  { %v246_v29 = vadd.f32 %v245_v27, %v1234_v9  ;;  %v247_v30 = vpop.f32.mrb[7].mxu0 }
 0x15f   :  { %v248_v31 = vadd.f32 %v247_v30, %v1236_v10  ;;  %595 = vmatprep.mubr.f32.mxu0 %v423_v26 }
 0x160   :  { %596 = vmatmul.mubr.f32.gmra.mrb[68].mxu0 %v422_v28  ;;  %v424_v34 = vmax.f32 %v246_v29, 0.0 }
 0x161   :  { %v425_v32 = vmax.f32 %v248_v31, 0.0  ;;  %v251_v33 = vpop.f32.mrb[8].mxu0 }
 0x162   :  { %v252_v35 = vadd.f32 %v251_v33, %v1234_v9  ;;  %v253_v36 = vpop.f32.mrb[9].mxu0 }
 0x163   :  { %600 = vmatprep.mubr.f32.mxu0 %v425_v32  ;;  %v254_v37 = vadd.f32 %v253_v36, %v1236_v10 }
 0x164   :  { %601 = vmatmul.mubr.f32.gmra.mrb[70].mxu0 %v424_v34  ;;  %v426_v40 = vmax.f32 %v252_v35, 0.0 }
 0x165   :  { %v257_v38 = vpop.f32.mrb[10].mxu0  ;;  %v427_v39 = vmax.f32 %v254_v37, 0.0 }
 0x166   :  { %v258_v41 = vadd.f32 %v257_v38, %v1234_v9  ;;  %v259_v42 = vpop.f32.mrb[11].mxu0 }
 0x167   :  { %v260_v43 = vadd.f32 %v259_v42, %v1236_v10  ;;  %605 = vmatprep.mubr.f32.mxu1 %v427_v39 }
 0x168   :  { %606 = vmatmul.mubr.f32.vlgmr.msra.gmra.mrb[0].mxu1 %v426_v40  ;;  %v428_v46 = vmax.f32 %v258_v41, 0.0 }
 0x169   :  { %v429_v44 = vmax.f32 %v260_v43, 0.0  ;;  %v263_v45 = vpop.f32.mrb[12].mxu0 }
 0x16a   :  { %v264_v47 = vadd.f32 %v263_v45, %v1234_v9  ;;  %v265_v48 = vpop.f32.mrb[13].mxu0 }
 0x16b   :  { %v266_v49 = vadd.f32 %v265_v48, %v1236_v10  ;;  %610 = vmatprep.mubr.f32.mxu1 %v429_v44 }
 0x16c   :  { %611 = vmatmul.mubr.f32.gmra.mrb[2].mxu1 %v428_v46  ;;  %v430_v52 = vmax.f32 %v264_v47, 0.0 }
 0x16d   :  { %v431_v50 = vmax.f32 %v266_v49, 0.0  ;;  %v269_v51 = vpop.f32.mrb[14].mxu0 }
 0x16e   :  { %v270_v54 = vadd.f32 %v269_v51, %v1234_v9  ;;  %v271_v55 = vpop.f32.mrb[15].mxu0 }
 0x16f   :  { %v272_v56 = vadd.f32 %v271_v55, %v1236_v10  ;;  %615 = vmatprep.mubr.f32.mxu1 %v431_v50 }
 0x170   :  { %616 = vmatmul.mubr.f32.gmra.mrb[4].mxu1 %v430_v52  ;;  %v432_v59 = vmax.f32 %v270_v54, 0.0 }
 0x171   :  { %v433_v57 = vmax.f32 %v272_v56, 0.0  ;;  %v275_v58 = vpop.f32.mrb[16].mxu0 }
 0x172   :  { %v276_v60 = vadd.f32 %v275_v58, %v1234_v9  ;;  %v277_v61 = vpop.f32.mrb[17].mxu0 }
 0x173   :  { %v278_v62 = vadd.f32 %v277_v61, %v1236_v10  ;;  %620 = vmatprep.mubr.f32.mxu1 %v433_v57 }
 0x174   :  { %621 = vmatmul.mubr.f32.gmra.mrb[6].mxu1 %v432_v59  ;;  %v434_v1 = vmax.f32 %v276_v60, 0.0 }
 0x175   :  { %v435_v53 = vmax.f32 %v278_v62, 0.0  ;;  %v281_v63 = vpop.f32.mrb[18].mxu0 }
 0x176   :  { %v282_v2 = vadd.f32 %v281_v63, %v1234_v9  ;;  %v283_v3 = vpop.f32.mrb[19].mxu0 }
 0x177   :  { %v284_v4 = vadd.f32 %v283_v3, %v1236_v10  ;;  %625 = vmatprep.mubr.f32.mxu1 %v435_v53 }
 0x178   :  { %626 = vmatmul.mubr.f32.gmra.mrb[8].mxu1 %v434_v1  ;;  %v436_v7 = vmax.f32 %v282_v2, 0.0 }
 0x179   :  { %v437_v5 = vmax.f32 %v284_v4, 0.0  ;;  %v287_v6 = vpop.f32.mrb[20].mxu0 }
 0x17a   :  { %v288_v8 = vadd.f32 %v287_v6, %v1234_v9  ;;  %v289_v11 = vpop.f32.mrb[21].mxu0 }
 0x17b   :  { %v290_v12 = vadd.f32 %v289_v11, %v1236_v10  ;;  %630 = vmatprep.mubr.f32.mxu1 %v437_v5 }
 0x17c   :  { %631 = vmatmul.mubr.f32.gmra.mrb[10].mxu1 %v436_v7  ;;  %v438_v15 = vmax.f32 %v288_v8, 0.0 }
 0x17d   :  { %v439_v13 = vmax.f32 %v290_v12, 0.0  ;;  %v293_v14 = vpop.f32.mrb[22].mxu0 }
 0x17e   :  { %v294_v16 = vadd.f32 %v293_v14, %v1234_v9  ;;  %v295_v0 = vpop.f32.mrb[23].mxu0 }
 0x17f   :  { %v296_v17 = vadd.f32 %v295_v0, %v1236_v10  ;;  %635 = vmatprep.mubr.f32.mxu1 %v439_v13 }
 0x180   :  { %636 = vmatmul.mubr.f32.gmra.mrb[12].mxu1 %v438_v15  ;;  %v440_v20 = vmax.f32 %v294_v16, 0.0 }
 0x181   :  { %v441_v18 = vmax.f32 %v296_v17, 0.0  ;;  %v299_v19 = vpop.f32.mrb[24].mxu0 }
 0x182   :  { %v300_v21 = vadd.f32 %v299_v19, %v1234_v9  ;;  %v301_v22 = vpop.f32.mrb[25].mxu0 }
 0x183   :  { %v302_v23 = vadd.f32 %v301_v22, %v1236_v10  ;;  %640 = vmatprep.mubr.f32.mxu1 %v441_v18 }
 0x184   :  { %641 = vmatmul.mubr.f32.gmra.mrb[14].mxu1 %v440_v20  ;;  %v442_v26 = vmax.f32 %v300_v21, 0.0 }
 0x185   :  { %v443_v24 = vmax.f32 %v302_v23, 0.0  ;;  %v305_v25 = vpop.f32.mrb[26].mxu0 }
 0x186   :  { %v306_v27 = vadd.f32 %v305_v25, %v1234_v9  ;;  %v307_v28 = vpop.f32.mrb[27].mxu0 }
 0x187   :  { %v308_v29 = vadd.f32 %v307_v28, %v1236_v10  ;;  %645 = vmatprep.mubr.f32.mxu1 %v443_v24 }
 0x188   :  { %646 = vmatmul.mubr.f32.gmra.mrb[16].mxu1 %v442_v26  ;;  %v444_v32 = vmax.f32 %v306_v27, 0.0 }
 0x189   :  { %v445_v30 = vmax.f32 %v308_v29, 0.0  ;;  %v311_v31 = vpop.f32.mrb[28].mxu0 }
 0x18a   :  { %v312_v33 = vadd.f32 %v311_v31, %v1234_v9  ;;  %v313_v34 = vpop.f32.mrb[29].mxu0 }
 0x18b   :  { %v314_v35 = vadd.f32 %v313_v34, %v1236_v10  ;;  %650 = vmatprep.mubr.f32.mxu1 %v445_v30 }
 0x18c   :  { %651 = vmatmul.mubr.f32.gmra.mrb[18].mxu1 %v444_v32  ;;  %v446_v38 = vmax.f32 %v312_v33, 0.0 }
 0x18d   :  { %v447_v36 = vmax.f32 %v314_v35, 0.0  ;;  %v317_v37 = vpop.f32.mrb[30].mxu0 }
 0x18e   :  { %v318_v39 = vadd.f32 %v317_v37, %v1234_v9  ;;  %v319_v40 = vpop.f32.mrb[31].mxu0 }
 0x18f   :  { %v320_v41 = vadd.f32 %v319_v40, %v1236_v10  ;;  %655 = vmatprep.mubr.f32.mxu1 %v447_v36 }
 0x190   :  { %656 = vmatmul.mubr.f32.gmra.mrb[20].mxu1 %v446_v38  ;;  %v448_v44 = vmax.f32 %v318_v39, 0.0 }
 0x191   :  { %v449_v42 = vmax.f32 %v320_v41, 0.0  ;;  %v323_v43 = vpop.f32.mrb[32].mxu0 }
 0x192   :  { %v324_v45 = vadd.f32 %v323_v43, %v1234_v9  ;;  %v325_v46 = vpop.f32.mrb[33].mxu0 }
 0x193   :  { %v326_v47 = vadd.f32 %v325_v46, %v1236_v10  ;;  %660 = vmatprep.mubr.f32.mxu1 %v449_v42 }
 0x194   :  { %661 = vmatmul.mubr.f32.gmra.mrb[22].mxu1 %v448_v44  ;;  %v450_v50 = vmax.f32 %v324_v45, 0.0 }
 0x195   :  { %v451_v48 = vmax.f32 %v326_v47, 0.0  ;;  %v329_v49 = vpop.f32.mrb[34].mxu0 }
 0x196   :  { %v330_v51 = vadd.f32 %v329_v49, %v1234_v9  ;;  %v331_v52 = vpop.f32.mrb[35].mxu0 }
 0x197   :  { %v332_v54 = vadd.f32 %v331_v52, %v1236_v10  ;;  %665 = vmatprep.mubr.f32.mxu1 %v451_v48 }
 0x198   :  { %666 = vmatmul.mubr.f32.gmra.mrb[24].mxu1 %v450_v50  ;;  %v452_v57 = vmax.f32 %v330_v51, 0.0 }
 0x199   :  { %v453_v55 = vmax.f32 %v332_v54, 0.0  ;;  %v335_v56 = vpop.f32.mrb[36].mxu0 }
 0x19a   :  { %v336_v58 = vadd.f32 %v335_v56, %v1234_v9  ;;  %v337_v59 = vpop.f32.mrb[37].mxu0 }
 0x19b   :  { %v338_v60 = vadd.f32 %v337_v59, %v1236_v10  ;;  %670 = vmatprep.mubr.f32.mxu1 %v453_v55 }
 0x19c   :  { %671 = vmatmul.mubr.f32.gmra.mrb[26].mxu1 %v452_v57  ;;  %v454_v53 = vmax.f32 %v336_v58, 0.0 }
 0x19d   :  { %v455_v61 = vmax.f32 %v338_v60, 0.0  ;;  %v341_v62 = vpop.f32.mrb[38].mxu0 }
 0x19e   :  { %v342_v63 = vadd.f32 %v341_v62, %v1234_v9  ;;  %v343_v1 = vpop.f32.mrb[39].mxu0 }
 0x19f   :  { %v344_v2 = vadd.f32 %v343_v1, %v1236_v10  ;;  %675 = vmatprep.mubr.f32.mxu1 %v455_v61 }
 0x1a0   :  { %676 = vmatmul.mubr.f32.gmra.mrb[28].mxu1 %v454_v53  ;;  %v456_v5 = vmax.f32 %v342_v63, 0.0 }
 0x1a1   :  { %v457_v3 = vmax.f32 %v344_v2, 0.0  ;;  %v347_v4 = vpop.f32.mrb[40].mxu0 }
 0x1a2   :  { %v348_v6 = vadd.f32 %v347_v4, %v1234_v9  ;;  %v349_v7 = vpop.f32.mrb[41].mxu0 }
 0x1a3   :  { %v350_v8 = vadd.f32 %v349_v7, %v1236_v10  ;;  %680 = vmatprep.mubr.f32.mxu1 %v457_v3 }
 0x1a4   :  { %681 = vmatmul.mubr.f32.gmra.mrb[30].mxu1 %v456_v5  ;;  %v458_v13 = vmax.f32 %v348_v6, 0.0 }
 0x1a5   :  { %v459_v11 = vmax.f32 %v350_v8, 0.0  ;;  %v353_v12 = vpop.f32.mrb[42].mxu0 }
 0x1a6   :  { %v354_v14 = vadd.f32 %v353_v12, %v1234_v9  ;;  %v355_v15 = vpop.f32.mrb[43].mxu0 }
 0x1a7   :  { %v356_v16 = vadd.f32 %v355_v15, %v1236_v10  ;;  %685 = vmatprep.mubr.f32.mxu1 %v459_v11 }
 0x1a8   :  { %686 = vmatmul.mubr.f32.gmra.mrb[32].mxu1 %v458_v13  ;;  %v460_v18 = vmax.f32 %v354_v14, 0.0 }
 0x1a9   :  { %v461_v0 = vmax.f32 %v356_v16, 0.0  ;;  %v359_v17 = vpop.f32.mrb[44].mxu0 }
 0x1aa   :  { %v360_v19 = vadd.f32 %v359_v17, %v1234_v9  ;;  %v361_v20 = vpop.f32.mrb[45].mxu0 }
 0x1ab   :  { %v362_v21 = vadd.f32 %v361_v20, %v1236_v10  ;;  %690 = vmatprep.mubr.f32.mxu1 %v461_v0  ;;  %v1302_v0 = vld [vmem:[#allocation10] ss:$0 sm:$0xff] }
 0x1ac   :  { %691 = vmatmul.mubr.f32.gmra.mrb[34].mxu1 %v460_v18  ;;  %v462_v24 = vmax.f32 %v360_v19, 0.0 }
 0x1ad   :  { %v463_v22 = vmax.f32 %v362_v21, 0.0  ;;  %v365_v23 = vpop.f32.mrb[46].mxu0 }
 0x1ae   :  { %v366_v25 = vadd.f32 %v365_v23, %v1234_v9  ;;  %v367_v26 = vpop.f32.mrb[47].mxu0 }
 0x1af   :  { %v368_v27 = vadd.f32 %v367_v26, %v1236_v10  ;;  %695 = vmatprep.mubr.f32.mxu1 %v463_v22 }
 0x1b0   :  { %696 = vmatmul.mubr.f32.gmra.mrb[36].mxu1 %v462_v24  ;;  %v464_v30 = vmax.f32 %v366_v25, 0.0 }
 0x1b1   :  { %v465_v28 = vmax.f32 %v368_v27, 0.0  ;;  %v371_v29 = vpop.f32.mrb[48].mxu0 }
 0x1b2   :  { %v372_v31 = vadd.f32 %v371_v29, %v1234_v9  ;;  %v373_v32 = vpop.f32.mrb[49].mxu0 }
 0x1b3   :  { %v374_v33 = vadd.f32 %v373_v32, %v1236_v10  ;;  %700 = vmatprep.mubr.f32.mxu1 %v465_v28 }
 0x1b4   :  { %701 = vmatmul.mubr.f32.gmra.mrb[38].mxu1 %v464_v30  ;;  %v466_v36 = vmax.f32 %v372_v31, 0.0 }
 0x1b5   :  { %v467_v34 = vmax.f32 %v374_v33, 0.0  ;;  %v377_v35 = vpop.f32.mrb[50].mxu0 }
 0x1b6   :  { %v378_v37 = vadd.f32 %v377_v35, %v1234_v9  ;;  %v379_v38 = vpop.f32.mrb[51].mxu0 }
 0x1b7   :  { %v380_v39 = vadd.f32 %v379_v38, %v1236_v10  ;;  %705 = vmatprep.mubr.f32.mxu1 %v467_v34 }
 0x1b8   :  { %706 = vmatmul.mubr.f32.gmra.mrb[40].mxu1 %v466_v36  ;;  %v468_v42 = vmax.f32 %v378_v37, 0.0 }
 0x1b9   :  { %v469_v40 = vmax.f32 %v380_v39, 0.0  ;;  %v383_v41 = vpop.f32.mrb[52].mxu0 }
 0x1ba   :  { %v384_v43 = vadd.f32 %v383_v41, %v1234_v9  ;;  %v385_v44 = vpop.f32.mrb[53].mxu0 }
 0x1bb   :  { %v386_v45 = vadd.f32 %v385_v44, %v1236_v10  ;;  %710 = vmatprep.mubr.f32.mxu1 %v469_v40 }
 0x1bc   :  { %711 = vmatmul.mubr.f32.gmra.mrb[42].mxu1 %v468_v42  ;;  %v470_v48 = vmax.f32 %v384_v43, 0.0 }
 0x1bd   :  { %v471_v46 = vmax.f32 %v386_v45, 0.0  ;;  %v389_v47 = vpop.f32.mrb[54].mxu0 }
 0x1be   :  { %v390_v49 = vadd.f32 %v389_v47, %v1234_v9  ;;  %v391_v50 = vpop.f32.mrb[55].mxu0 }
 0x1bf   :  { %v392_v51 = vadd.f32 %v391_v50, %v1236_v10  ;;  %715 = vmatprep.mubr.f32.mxu1 %v471_v46 }
 0x1c0   :  { %716 = vmatmul.mubr.f32.gmra.mrb[44].mxu1 %v470_v48  ;;  %v472_v55 = vmax.f32 %v390_v49, 0.0 }
 0x1c1   :  { %v473_v52 = vmax.f32 %v392_v51, 0.0  ;;  %v395_v54 = vpop.f32.mrb[56].mxu0 }
 0x1c2   :  { %v396_v56 = vadd.f32 %v395_v54, %v1234_v9  ;;  %v397_v57 = vpop.f32.mrb[57].mxu0 }
 0x1c3   :  { %v398_v58 = vadd.f32 %v397_v57, %v1236_v10  ;;  %720 = vmatprep.mubr.f32.mxu1 %v473_v52 }
 0x1c4   :  { %721 = vmatmul.mubr.f32.gmra.mrb[46].mxu1 %v472_v55  ;;  %v474_v61 = vmax.f32 %v396_v56, 0.0 }
 0x1c5   :  { %v475_v59 = vmax.f32 %v398_v58, 0.0  ;;  %v401_v60 = vpop.f32.mrb[58].mxu0 }
 0x1c6   :  { %v402_v62 = vadd.f32 %v401_v60, %v1234_v9  ;;  %v403_v53 = vpop.f32.mrb[59].mxu0 }
 0x1c7   :  { %v404_v63 = vadd.f32 %v403_v53, %v1236_v10  ;;  %725 = vmatprep.mubr.f32.mxu1 %v475_v59 }
 0x1c8   :  { %726 = vmatmul.mubr.f32.gmra.mrb[48].mxu1 %v474_v61  ;;  %v476_v3 = vmax.f32 %v402_v62, 0.0 }
 0x1c9   :  { %v477_v1 = vmax.f32 %v404_v63, 0.0  ;;  %v407_v2 = vpop.f32.mrb[60].mxu0 }
 0x1ca   :  { %v408_v4 = vadd.f32 %v407_v2, %v1234_v9  ;;  %v409_v5 = vpop.f32.mrb[61].mxu0 }
 0x1cb   :  { %v410_v6 = vadd.f32 %v409_v5, %v1236_v10  ;;  %730 = vmatprep.mubr.f32.mxu1 %v477_v1 }
 0x1cc   :  { %731 = vmatmul.mubr.f32.gmra.mrb[50].mxu1 %v476_v3  ;;  %v478_v11 = vmax.f32 %v408_v4, 0.0 }
 0x1cd   :  { %v479_v7 = vmax.f32 %v410_v6, 0.0  ;;  %v413_v8 = vpop.f32.mrb[62].mxu0 }
 0x1ce   :  { %v414_v12 = vadd.f32 %v413_v8, %v1234_v9  ;;  %v415_v13 = vpop.f32.mrb[63].mxu0 }
 0x1cf   :  { %v416_v14 = vadd.f32 %v415_v13, %v1236_v10  ;;  %735 = vmatprep.mubr.f32.mxu1 %v479_v7 }
 0x1d0   :  { %736 = vmatmul.mubr.f32.gmra.mrb[52].mxu1 %v478_v11  ;;  %v480_v16 = vmax.f32 %v414_v12, 0.0 }
 0x1d1   :  { %v481_v15 = vmax.f32 %v416_v14, 0.0 }
 0x1d3   :  { %740 = vmatprep.mubr.f32.mxu1 %v481_v15 }
 0x1d4   :  { %741 = vmatmul.mubr.f32.gmra.mrb[54].mxu1 %v480_v16 }
 0x22b   :  { %v587_v17 = vpop.f32.mrb[64].mxu0 }
 0x22c   :  { %v588_v18 = vadd.f32 %v1302_v0, %v587_v17  ;;  %v589_v19 = vpop.f32.mrb[65].mxu0 }
 0x22e   :  { %746 = vst [vmem:[#allocation11] sm:$0xff] %v588_v18 }
 0x22f   :  { %v592_v20 = vpop.f32.mrb[66].mxu0 }
 0x230   :  { %v593_v21 = vadd.f32 %v1302_v0, %v592_v20  ;;  %v594_v9 = vpop.f32.mrb[67].mxu0 }
 0x232   :  { %747 = vst [vmem:[#allocation11 + $0x8] sm:$0xff] %v593_v21 }
 0x233   :  { %v597_v22 = vpop.f32.mrb[68].mxu0 }
 0x234   :  { %v598_v10 = vadd.f32 %v1302_v0, %v597_v22  ;;  %v599_v23 = vpop.f32.mrb[69].mxu0 }
 0x236   :  { %748 = vst [vmem:[#allocation11 + $0x10] sm:$0xff] %v598_v10 }
 0x237   :  { %v602_v24 = vpop.f32.mrb[70].mxu0 }
 0x238   :  { %v603_v25 = vadd.f32 %v1302_v0, %v602_v24  ;;  %v604_v26 = vpop.f32.mrb[71].mxu0 }
 0x23a   :  { %749 = vst [vmem:[#allocation11 + $0x18] sm:$0xff] %v603_v25 }
 0x23b   :  { %v607_v27 = vpop.f32.mrb[0].mxu1 }
 0x23c   :  { %v608_v28 = vadd.f32 %v1302_v0, %v607_v27  ;;  %v609_v29 = vpop.f32.mrb[1].mxu1 }
 0x23e   :  { %750 = vst [vmem:[#allocation11 + $0x20] sm:$0xff] %v608_v28 }
 0x23f   :  { %v612_v30 = vpop.f32.mrb[2].mxu1 }
 0x240   :  { %v613_v31 = vadd.f32 %v1302_v0, %v612_v30  ;;  %v614_v32 = vpop.f32.mrb[3].mxu1 }
 0x242   :  { %751 = vst [vmem:[#allocation11 + $0x28] sm:$0xff] %v613_v31 }
 0x243   :  { %v617_v33 = vpop.f32.mrb[4].mxu1 }
 0x244   :  { %v618_v34 = vadd.f32 %v1302_v0, %v617_v33  ;;  %v619_v35 = vpop.f32.mrb[5].mxu1 }
 0x246   :  { %752 = vst [vmem:[#allocation11 + $0x30] sm:$0xff] %v618_v34 }
 0x247   :  { %v622_v36 = vpop.f32.mrb[6].mxu1 }
 0x248   :  { %v623_v37 = vadd.f32 %v1302_v0, %v622_v36  ;;  %v624_v38 = vpop.f32.mrb[7].mxu1 }
 0x24a   :  { %753 = vst [vmem:[#allocation11 + $0x38] sm:$0xff] %v623_v37 }
 0x24b   :  { %v627_v39 = vpop.f32.mrb[8].mxu1 }
 0x24c   :  { %v628_v40 = vadd.f32 %v1302_v0, %v627_v39  ;;  %v629_v41 = vpop.f32.mrb[9].mxu1 }
 0x24e   :  { %754 = vst [vmem:[#allocation11 + $0x40] sm:$0xff] %v628_v40 }
 0x24f   :  { %v632_v42 = vpop.f32.mrb[10].mxu1 }
 0x250   :  { %v633_v43 = vadd.f32 %v1302_v0, %v632_v42  ;;  %v634_v44 = vpop.f32.mrb[11].mxu1 }
 0x252   :  { %755 = vst [vmem:[#allocation11 + $0x48] sm:$0xff] %v633_v43 }
 0x253   :  { %v637_v45 = vpop.f32.mrb[12].mxu1 }
 0x254   :  { %v638_v46 = vadd.f32 %v1302_v0, %v637_v45  ;;  %v639_v47 = vpop.f32.mrb[13].mxu1 }
 0x256   :  { %756 = vst [vmem:[#allocation11 + $0x50] sm:$0xff] %v638_v46 }
 0x257   :  { %v642_v48 = vpop.f32.mrb[14].mxu1 }
 0x258   :  { %v643_v49 = vadd.f32 %v1302_v0, %v642_v48  ;;  %v644_v50 = vpop.f32.mrb[15].mxu1 }
 0x25a   :  { %757 = vst [vmem:[#allocation11 + $0x58] sm:$0xff] %v643_v49 }
 0x25b   :  { %v647_v51 = vpop.f32.mrb[16].mxu1 }
 0x25c   :  { %v648_v52 = vadd.f32 %v1302_v0, %v647_v51  ;;  %v649_v54 = vpop.f32.mrb[17].mxu1 }
 0x25e   :  { %758 = vst [vmem:[#allocation11 + $0x60] sm:$0xff] %v648_v52 }
 0x25f   :  { %v652_v55 = vpop.f32.mrb[18].mxu1 }
 0x260   :  { %v653_v56 = vadd.f32 %v1302_v0, %v652_v55  ;;  %v654_v57 = vpop.f32.mrb[19].mxu1 }
 0x262   :  { %759 = vst [vmem:[#allocation11 + $0x68] sm:$0xff] %v653_v56 }
 0x263   :  { %v657_v58 = vpop.f32.mrb[20].mxu1 }
 0x264   :  { %v658_v59 = vadd.f32 %v1302_v0, %v657_v58  ;;  %v659_v60 = vpop.f32.mrb[21].mxu1 }
 0x266   :  { %760 = vst [vmem:[#allocation11 + $0x70] sm:$0xff] %v658_v59 }
 0x267   :  { %v662_v61 = vpop.f32.mrb[22].mxu1 }
 0x268   :  { %v663_v62 = vadd.f32 %v1302_v0, %v662_v61  ;;  %v664_v53 = vpop.f32.mrb[23].mxu1 }
 0x26a   :  { %761 = vst [vmem:[#allocation11 + $0x78] sm:$0xff] %v663_v62 }
 0x26b   :  { %v667_v63 = vpop.f32.mrb[24].mxu1 }
 0x26c   :  { %v668_v1 = vadd.f32 %v1302_v0, %v667_v63  ;;  %v669_v2 = vpop.f32.mrb[25].mxu1 }
 0x26e   :  { %762 = vst [vmem:[#allocation11 + $0x80] sm:$0xff] %v668_v1 }
 0x26f   :  { %v672_v3 = vpop.f32.mrb[26].mxu1 }
 0x270   :  { %v673_v4 = vadd.f32 %v1302_v0, %v672_v3  ;;  %v674_v5 = vpop.f32.mrb[27].mxu1 }
 0x272   :  { %763 = vst [vmem:[#allocation11 + $0x88] sm:$0xff] %v673_v4 }
 0x273   :  { %v677_v6 = vpop.f32.mrb[28].mxu1 }
 0x274   :  { %v678_v7 = vadd.f32 %v1302_v0, %v677_v6  ;;  %v679_v8 = vpop.f32.mrb[29].mxu1 }
 0x276   :  { %764 = vst [vmem:[#allocation11 + $0x90] sm:$0xff] %v678_v7 }
 0x277   :  { %v682_v11 = vpop.f32.mrb[30].mxu1 }
 0x278   :  { %v683_v12 = vadd.f32 %v1302_v0, %v682_v11  ;;  %v684_v13 = vpop.f32.mrb[31].mxu1 }
 0x27a   :  { %765 = vst [vmem:[#allocation11 + $0x98] sm:$0xff] %v683_v12 }
 0x27b   :  { %v687_v14 = vpop.f32.mrb[32].mxu1 }
 0x27c   :  { %v688_v15 = vadd.f32 %v1302_v0, %v687_v14  ;;  %v689_v16 = vpop.f32.mrb[33].mxu1 }
 0x27e   :  { %766 = vst [vmem:[#allocation11 + $0xa0] sm:$0xff] %v688_v15 }
 0x27f   :  { %v692_v17 = vpop.f32.mrb[34].mxu1 }
 0x280   :  { %v693_v18 = vadd.f32 %v1302_v0, %v692_v17  ;;  %v694_v19 = vpop.f32.mrb[35].mxu1 }
 0x282   :  { %767 = vst [vmem:[#allocation11 + $0xa8] sm:$0xff] %v693_v18 }
 0x283   :  { %v697_v20 = vpop.f32.mrb[36].mxu1 }
 0x284   :  { %v698_v21 = vadd.f32 %v1302_v0, %v697_v20  ;;  %v699_v9 = vpop.f32.mrb[37].mxu1 }
 0x286   :  { %768 = vst [vmem:[#allocation11 + $0xb0] sm:$0xff] %v698_v21 }
 0x287   :  { %v702_v22 = vpop.f32.mrb[38].mxu1 }
 0x288   :  { %v703_v10 = vadd.f32 %v1302_v0, %v702_v22  ;;  %v704_v23 = vpop.f32.mrb[39].mxu1 }
 0x28a   :  { %769 = vst [vmem:[#allocation11 + $0xb8] sm:$0xff] %v703_v10 }
 0x28b   :  { %v707_v24 = vpop.f32.mrb[40].mxu1 }
 0x28c   :  { %v708_v25 = vadd.f32 %v1302_v0, %v707_v24  ;;  %v709_v26 = vpop.f32.mrb[41].mxu1 }
 0x28e   :  { %770 = vst [vmem:[#allocation11 + $0xc0] sm:$0xff] %v708_v25 }
 0x28f   :  { %v712_v27 = vpop.f32.mrb[42].mxu1 }
 0x290   :  { %v713_v28 = vadd.f32 %v1302_v0, %v712_v27  ;;  %v714_v29 = vpop.f32.mrb[43].mxu1 }
 0x292   :  { %771 = vst [vmem:[#allocation11 + $0xc8] sm:$0xff] %v713_v28 }
 0x293   :  { %v717_v30 = vpop.f32.mrb[44].mxu1 }
 0x294   :  { %v718_v31 = vadd.f32 %v1302_v0, %v717_v30  ;;  %v719_v32 = vpop.f32.mrb[45].mxu1 }
 0x296   :  { %772 = vst [vmem:[#allocation11 + $0xd0] sm:$0xff] %v718_v31 }
 0x297   :  { %v722_v33 = vpop.f32.mrb[46].mxu1 }
 0x298   :  { %v723_v34 = vadd.f32 %v1302_v0, %v722_v33  ;;  %v724_v35 = vpop.f32.mrb[47].mxu1 }
 0x29a   :  { %773 = vst [vmem:[#allocation11 + $0xd8] sm:$0xff] %v723_v34 }
 0x29b   :  { %v727_v36 = vpop.f32.mrb[48].mxu1 }
 0x29c   :  { %v728_v37 = vadd.f32 %v1302_v0, %v727_v36  ;;  %v729_v38 = vpop.f32.mrb[49].mxu1 }
 0x29e   :  { %774 = vst [vmem:[#allocation11 + $0xe0] sm:$0xff] %v728_v37 }
 0x29f   :  { %v732_v39 = vpop.f32.mrb[50].mxu1 }
 0x2a0   :  { %v733_v40 = vadd.f32 %v1302_v0, %v732_v39  ;;  %v734_v41 = vpop.f32.mrb[51].mxu1 }
 0x2a2   :  { %775 = vst [vmem:[#allocation11 + $0xe8] sm:$0xff] %v733_v40 }
 0x2a3   :  { %v737_v42 = vpop.f32.mrb[52].mxu1 }
 0x2a4   :  { %v738_v43 = vadd.f32 %v1302_v0, %v737_v42  ;;  %v739_v44 = vpop.f32.mrb[53].mxu1 }
 0x2a6   :  { %776 = vst [vmem:[#allocation11 + $0xf0] sm:$0xff] %v738_v43 }
 0x2a7   :  { %v742_v45 = vpop.f32.mrb[54].mxu1 }
 0x2a8   :  { %v743_v46 = vadd.f32 %v1302_v0, %v742_v45  ;;  %v744_v47 = vpop.f32.mrb[55].mxu1 }
 0x2aa   :  { %777 = vst [vmem:[#allocation11 + $0xf8] sm:$0xff] %v743_v46 }
 0x2ab   :  { %1043 = shalt.err (!%p1040_p2)
}
 0x2ac   :  { %s1044_s8 = scalar_lea.hbm %s1356_s5, 4096 }
 0x2ad   :  { %p1045_p3 = scmp.ne.s32.totalorder %s1356_s5, %s1044_s8  ;;  %p1048_p4 = scmp.lt.u32.totalorder %s1044_s8, %s1356_s5 }
 0x2af   :  { %p1050_p5 = pnand %p1048_p4, %p1045_p3 }
 0x2b1   :  { %1053 = shalt.err (!%p1050_p5)
}
 0x2b2   :  { %789 = dma.vmem_to_hbm [thread:$0]  %s784_s3, 4096, %s1356_s5, [#allocation4], %s1067_s18, %s1067_s18, %s1068_s19  }
 0x2b3   :  { %1060 = dma.done.wait [#allocation4], 4096  }
 0x2b4   :  { %1061 = vsyncadd [#allocation4], 4294963200 }
 0x2b5   :  { %793 = vsyncpa [#allocation3], 1 }
 0x2b6   :  { %794 = vsyncpa [#allocation6], 1 }
 0x2b7   :  { %795 = vsyncpa [#allocation9], 1 }
 0x2b8   :  { %796 = vsyncpa [#allocation4], 1 }

</bundles_post_ra>
